<compile_context>
chip_gen: v7x
topology: tpu7x:2x2x1
jax: 0.10.0
libtpu: 0.0.40
codegen_flags: <defaults>
</compile_context>

<pallas_src>
import jax
import jax.numpy as jnp
from jax.experimental import pallas as pl
from jax.experimental.pallas import tpu as pltpu


def _gate_mlp_pos_kernel(x_ref, chs_ref, w1x_ref, w1e_tab_ref, sel_ref,
                         cpat_ref, b1_ref, w2_ref, out_ref):
    """Fused forward for one batch tile.
    x_ref:        (TB, Dx)          bf16  flattened input tile
    chs_ref:      (TB, k)           i32   embedding indices
    w1x_ref:      (Dx, HID)         bf16  linear1 weight, x block, transposed
    w1e_tab_ref:  (k*n_vocab, HID)  bf16  embedding table folded through linear1 emb block
    sel_ref:      (k, k*n_vocab)    f32   static slot selector: sel[j, m] = (m // n_vocab == j)
    cpat_ref:     (1, k*n_vocab)    f32   static per-lane class target: cpat[0, m] = m % n_vocab
    b1_ref:       (1, HID)          f32   linear1 bias
    w2_ref:       (HID, OUT)        bf16  linear2 weight, transposed (no bias)
    out_ref:      (TB, OUT)         f32
    """
    # Repeat chs across each slot's vocab lanes with one tiny MXU matmul
    # (TB, k) @ (k, k*n_vocab), then build the one-hot by comparing against the
    # static per-lane class-id pattern (values are small exact integers in f32).
    chs_rep = jnp.dot(chs_ref[...].astype(jnp.float32), sel_ref[...],
                      preferred_element_type=jnp.float32)          # (TB, k*n_vocab)
    onehot = (chs_rep == cpat_ref[...]).astype(jnp.float32).astype(jnp.bfloat16)

    # linear1 = x-block matmul + (one-hot @ folded-table) matmul + bias, f32 accum.
    pre = jnp.dot(x_ref[...], w1x_ref[...], preferred_element_type=jnp.float32)
    pre = pre + jnp.dot(onehot, w1e_tab_ref[...], preferred_element_type=jnp.float32)
    pre = pre + b1_ref[...]                                        # (1, HID) broadcast, f32

    h = jnp.maximum(pre, 0.0)                                      # ReLU, f32
    # TODO(synk): nn.Dropout(0.3) is identity here (eval mode); training-mode RNG
    # masking is not reproduced.
    out_ref[...] = jnp.dot(h.astype(jnp.bfloat16), w2_ref[...],
                           preferred_element_type=jnp.float32).astype(out_ref.dtype)


def prepare_gate_mlp_pos_params(params, *, input_size, k):
    """Hoisted parameter-only precompute: run once per weight set, reuse per call."""
    table = params["emb"].astype(jnp.float32)          # (n_vocab, emb_dim)
    w1 = params["w1"].astype(jnp.float32)              # (HID, Dx + k*emb_dim)
    b1 = params["b1"].astype(jnp.float32)              # (HID,)
    w2 = params["w2"].astype(jnp.float32)              # (OUT, HID)

    n_vocab, emb_dim = table.shape
    HID = w1.shape[0]
    Dx = input_size
    assert w1.shape[1] == Dx + k * emb_dim, (w1.shape, Dx, k, emb_dim)

    # linear1 weight, split and transposed to lane-dense (K, N) layout.
    w1x_t = w1[:, :Dx].T                                           # (Dx, HID)
    w1e_t = w1[:, Dx:].T.reshape(k, emb_dim, HID)                  # (k, emb_dim, HID)
    # Fold the embedding table through linear1's embedding block (f32, then cast):
    #   a[j*n_vocab + v, h] = sum_d table[v, d] * W1^T[Dx + j*emb_dim + d, h]
    # Handles non-square tables too (one-hot is over the vocab axis, fold over emb_dim).
    a = jnp.einsum("vd,jdh->jvh", table, w1e_t).reshape(k * n_vocab, HID)

    # Static helpers for the in-kernel one-hot (slot selector + per-lane class id).
    m = jnp.arange(k * n_vocab)[None, :]
    sel = (m // n_vocab == jnp.arange(k)[:, None]).astype(jnp.float32)   # (k, k*n_vocab)
    cpat = (m % n_vocab).astype(jnp.float32)                             # (1, k*n_vocab)

    return dict(
        w1x=w1x_t.astype(jnp.bfloat16),
        w1e_tab=a.astype(jnp.bfloat16),
        sel=sel,
        cpat=cpat,
        b1=b1.reshape(1, HID),
        w2=w2.T.astype(jnp.bfloat16),
    )


def gate_mlp_pos_forward(x, chs, prep, *, tile_b=512):
    B = x.shape[0]
    w1x, w1e_tab = prep["w1x"], prep["w1e_tab"]
    sel, cpat = prep["sel"], prep["cpat"]
    b1, w2 = prep["b1"], prep["w2"]

    Dx, HID = w1x.shape
    OUT = w2.shape[1]
    k = sel.shape[0]
    De = sel.shape[1]                                   # k * n_vocab

    x_flat = x.reshape(B, Dx).astype(jnp.bfloat16)
    chs_i = chs.astype(jnp.int32)

    # Batch tiling: if B is small the block equals the full batch dim (satisfies
    # the (8,128) rule via "equal to full dim"); otherwise pad B up to a multiple
    # of tile_b and stream tiles while weights stay resident.
    if B <= tile_b:
        tb, Bp = B, B
    else:
        tb = tile_b
        Bp = pl.cdiv(B, tb) * tb
        if Bp != B:
            x_flat = jnp.pad(x_flat, ((0, Bp - B), (0, 0)))
            chs_i = jnp.pad(chs_i, ((0, Bp - B), (0, 0)))

    def resident(shape):
        return pl.BlockSpec(shape, lambda i: (0, 0))    # DMA'd once, stays in VMEM

    out = pl.pallas_call(
        _gate_mlp_pos_kernel,
        out_shape=jax.ShapeDtypeStruct((Bp, OUT), jnp.float32),
        grid=(Bp // tb,),
        in_specs=[
            pl.BlockSpec((tb, Dx), lambda i: (i, 0)),   # x: streamed per batch tile
            pl.BlockSpec((tb, k), lambda i: (i, 0)),    # chs: streamed per batch tile
            resident((Dx, HID)),                        # linear1 x-block weight
            resident((De, HID)),                        # folded embedding table
            resident((k, De)),                          # slot selector (static)
            resident((1, De)),                          # per-lane class ids (static)
            resident((1, HID)),                         # linear1 bias
            resident((HID, OUT)),                       # linear2 weight
        ],
        out_specs=pl.BlockSpec((tb, OUT), lambda i: (i, 0)),
        compiler_params=pltpu.CompilerParams(
            dimension_semantics=("parallel",)),
    )(x_flat, chs_i, w1x, w1e_tab, sel, cpat, b1, w2)
    return out[:B]


def _reference(x, chs, params):
    """Pure-JAX f32 reference matching the PyTorch forward (eval-mode dropout)."""
    B = x.shape[0]
    out = x.reshape(B, -1)
    emb = params["emb"][chs].reshape(B, -1)
    out = jnp.concatenate([out, emb], axis=-1)
    out = out @ params["w1"].T + params["b1"]
    out = jnp.maximum(out, 0.0)
    return out @ params["w2"].T


if __name__ == "__main__":
    I_SIZE, WIDTH, HEIGHT = 4, 16, 16
    N_CH, RATE, O_SIZE = 32, 0.5, 1
    B = 2

    input_size = I_SIZE * WIDTH * HEIGHT            # 1024
    k = int(N_CH * RATE)                            # 16 index slots
    lin1_in = input_size + N_CH * k                 # 1536
    hidden = lin1_in // 32                          # 48

    key = jax.random.PRNGKey(0)
    ks = jax.random.split(key, 6)

    def uinit(kk, shape, fan_in):
        lim = 1.0 / (fan_in ** 0.5)
        return jax.random.uniform(kk, shape, jnp.float32, -lim, lim)

    params = dict(
        emb=jax.random.normal(ks[0], (N_CH, N_CH), jnp.float32),   # nn.Embedding default N(0,1)
        w1=uinit(ks[1], (hidden, lin1_in), lin1_in),
        b1=uinit(ks[2], (hidden,), lin1_in),
        w2=uinit(ks[3], (O_SIZE, hidden), hidden),                 # linear2 has bias=False
    )

    x = jax.random.normal(ks[4], (B, I_SIZE, HEIGHT, WIDTH), jnp.float32)
    chs = jax.random.randint(ks[5], (B, k), 0, N_CH, jnp.int32)

    prep = prepare_gate_mlp_pos_params(params, input_size=input_size, k=k)
    out = gate_mlp_pos_forward(x, chs, prep)
    out = jax.block_until_ready(out)

    ref = _reference(x, chs, params)
    assert out.shape == (B, O_SIZE), out.shape
    assert bool(jnp.all(jnp.isfinite(out)))
    # bf16 activations/weights vs a pure-f32 reference: tolerance set for bf16 rounding.
    assert bool(jnp.allclose(out, ref, atol=1e-2, rtol=1e-2)), "mismatch vs JAX reference"

    print("KERNEL_OK")
</pallas_src>

<mosaic_0001>
module attributes {stable_mosaic.version = 11 : i64} {
  func.func @_gate_mlp_pos_kernel(%arg0: i32, %arg1: memref<2x1024xbf16, #tpu.memory_space<vmem>>, %arg2: memref<2x16xi32, #tpu.memory_space<vmem>>, %arg3: memref<1024x48xbf16, #tpu.memory_space<vmem>>, %arg4: memref<512x48xbf16, #tpu.memory_space<vmem>>, %arg5: memref<16x512xf32, #tpu.memory_space<vmem>>, %arg6: memref<1x512xf32, #tpu.memory_space<vmem>>, %arg7: memref<1x48xf32, #tpu.memory_space<vmem>>, %arg8: memref<48x1xbf16, #tpu.memory_space<vmem>>, %arg9: memref<2x1xf32, #tpu.memory_space<vmem>>) attributes {dimension_semantics = [#tpu.dimension_semantics<parallel>], iteration_bounds = array<i64: 1>, scalar_prefetch = 0 : i64, scratch_operands = 0 : i64, tpu.core_type = #tpu.core_type<tc>, window_params = [{transform_indices = @transform_0, window_bounds = array<i64: 2, 1024>}, {transform_indices = @transform_1, window_bounds = array<i64: 2, 16>}, {pipeline_mode = #tpu.pipeline_mode<synchronous>, transform_indices = @transform_2, window_bounds = array<i64: 1024, 48>}, {pipeline_mode = #tpu.pipeline_mode<synchronous>, transform_indices = @transform_3, window_bounds = array<i64: 512, 48>}, {pipeline_mode = #tpu.pipeline_mode<synchronous>, transform_indices = @transform_4, window_bounds = array<i64: 16, 512>}, {pipeline_mode = #tpu.pipeline_mode<synchronous>, transform_indices = @transform_5, window_bounds = array<i64: 1, 512>}, {pipeline_mode = #tpu.pipeline_mode<synchronous>, transform_indices = @transform_6, window_bounds = array<i64: 1, 48>}, {pipeline_mode = #tpu.pipeline_mode<synchronous>, transform_indices = @transform_7, window_bounds = array<i64: 48, 1>}, {transform_indices = @transform_8, window_bounds = array<i64: 2, 1>}]} {
    %c0 = arith.constant 0 : index
    %c0_0 = arith.constant 0 : index
    %0 = vector.load %arg2[%c0, %c0_0] : memref<2x16xi32, #tpu.memory_space<vmem>>, vector<2x16xi32>
    %1 = arith.sitofp %0 : vector<2x16xi32> to vector<2x16xf32>
    %c0_1 = arith.constant 0 : index
    %c0_2 = arith.constant 0 : index
    %2 = vector.load %arg5[%c0_1, %c0_2] : memref<16x512xf32, #tpu.memory_space<vmem>>, vector<16x512xf32>
    %cst = arith.constant dense<0.000000e+00> : vector<2x512xf32>
    %3 = tpu.matmul %1, %2, %cst {dimension_numbers = #tpu.dot_dimension_numbers<[1], [0], [0], [1], [0, 0, 1, 1], [], []>} : vector<2x16xf32>, vector<16x512xf32>, vector<2x512xf32> -> vector<2x512xf32>
    %c0_3 = arith.constant 0 : index
    %c0_4 = arith.constant 0 : index
    %4 = vector.load %arg6[%c0_3, %c0_4] : memref<1x512xf32, #tpu.memory_space<vmem>>, vector<1x512xf32>
    %5 = vector.broadcast %4 : vector<1x512xf32> to vector<2x512xf32>
    %6 = arith.cmpf oeq, %3, %5 : vector<2x512xf32>
    %7 = arith.extui %6 : vector<2x512xi1> to vector<2x512xi32>
    %8 = arith.sitofp %7 : vector<2x512xi32> to vector<2x512xf32>
    %9 = arith.truncf %8 : vector<2x512xf32> to vector<2x512xbf16>
    %c0_5 = arith.constant 0 : index
    %c0_6 = arith.constant 0 : index
    %10 = vector.load %arg1[%c0_5, %c0_6] : memref<2x1024xbf16, #tpu.memory_space<vmem>>, vector<2x1024xbf16>
    %c0_7 = arith.constant 0 : index
    %c0_8 = arith.constant 0 : index
    %11 = vector.load %arg3[%c0_7, %c0_8] : memref<1024x48xbf16, #tpu.memory_space<vmem>>, vector<1024x48xbf16>
    %cst_9 = arith.constant dense<0.000000e+00> : vector<2x48xf32>
    %12 = tpu.matmul %10, %11, %cst_9 {dimension_numbers = #tpu.dot_dimension_numbers<[1], [0], [0], [1], [0, 0, 1, 1], [], []>} : vector<2x1024xbf16>, vector<1024x48xbf16>, vector<2x48xf32> -> vector<2x48xf32>
    %c0_10 = arith.constant 0 : index
    %c0_11 = arith.constant 0 : index
    %13 = vector.load %arg4[%c0_10, %c0_11] : memref<512x48xbf16, #tpu.memory_space<vmem>>, vector<512x48xbf16>
    %cst_12 = arith.constant dense<0.000000e+00> : vector<2x48xf32>
    %14 = tpu.matmul %9, %13, %cst_12 {dimension_numbers = #tpu.dot_dimension_numbers<[1], [0], [0], [1], [0, 0, 1, 1], [], []>} : vector<2x512xbf16>, vector<512x48xbf16>, vector<2x48xf32> -> vector<2x48xf32>
    %15 = arith.addf %12, %14 : vector<2x48xf32>
    %c0_13 = arith.constant 0 : index
    %c0_14 = arith.constant 0 : index
    %16 = vector.load %arg7[%c0_13, %c0_14] : memref<1x48xf32, #tpu.memory_space<vmem>>, vector<1x48xf32>
    %17 = vector.broadcast %16 : vector<1x48xf32> to vector<2x48xf32>
    %18 = arith.addf %15, %17 : vector<2x48xf32>
    %cst_15 = arith.constant 0.000000e+00 : f32
    %19 = vector.broadcast %cst_15 : f32 to vector<2x48xf32>
    %20 = arith.maximumf %18, %19 : vector<2x48xf32>
    %21 = arith.truncf %20 : vector<2x48xf32> to vector<2x48xbf16>
    %c0_16 = arith.constant 0 : index
    %c0_17 = arith.constant 0 : index
    %22 = vector.load %arg8[%c0_16, %c0_17] : memref<48x1xbf16, #tpu.memory_space<vmem>>, vector<48x1xbf16>
    %cst_18 = arith.constant dense<0.000000e+00> : vector<2x1xf32>
    %23 = tpu.matmul %21, %22, %cst_18 {dimension_numbers = #tpu.dot_dimension_numbers<[1], [0], [0], [1], [0, 0, 1, 1], [], []>} : vector<2x48xbf16>, vector<48x1xbf16>, vector<2x1xf32> -> vector<2x1xf32>
    %c0_19 = arith.constant 0 : index
    %c0_20 = arith.constant 0 : index
    %24 = vector.load %arg9[%c0_19, %c0_20] : memref<2x1xf32, #tpu.memory_space<vmem>>, vector<2x1xf32>
    tpu.vector_store %arg9[%c0_19, %c0_20], %23 {strides = array<i32>} : memref<2x1xf32, #tpu.memory_space<vmem>>, vector<2x1xf32>,
    return
  }
  func.func @transform_0(%arg0: i32) -> (i32, i32) {
    %c0_i32 = arith.constant 0 : i32
    %c0_i32_0 = arith.constant 0 : i32
    return %arg0, %c0_i32 : i32, i32
  }
  func.func @transform_1(%arg0: i32) -> (i32, i32) {
    %c0_i32 = arith.constant 0 : i32
    %c0_i32_0 = arith.constant 0 : i32
    return %arg0, %c0_i32 : i32, i32
  }
  func.func @transform_2(%arg0: i32) -> (i32, i32) {
    %c0_i32 = arith.constant 0 : i32
    %c0_i32_0 = arith.constant 0 : i32
    %c0_i32_1 = arith.constant 0 : i32
    return %c0_i32, %c0_i32_0 : i32, i32
  }
  func.func @transform_3(%arg0: i32) -> (i32, i32) {
    %c0_i32 = arith.constant 0 : i32
    %c0_i32_0 = arith.constant 0 : i32
    %c0_i32_1 = arith.constant 0 : i32
    return %c0_i32, %c0_i32_0 : i32, i32
  }
  func.func @transform_4(%arg0: i32) -> (i32, i32) {
    %c0_i32 = arith.constant 0 : i32
    %c0_i32_0 = arith.constant 0 : i32
    %c0_i32_1 = arith.constant 0 : i32
    return %c0_i32, %c0_i32_0 : i32, i32
  }
  func.func @transform_5(%arg0: i32) -> (i32, i32) {
    %c0_i32 = arith.constant 0 : i32
    %c0_i32_0 = arith.constant 0 : i32
    %c0_i32_1 = arith.constant 0 : i32
    return %c0_i32, %c0_i32_0 : i32, i32
  }
  func.func @transform_6(%arg0: i32) -> (i32, i32) {
    %c0_i32 = arith.constant 0 : i32
    %c0_i32_0 = arith.constant 0 : i32
    %c0_i32_1 = arith.constant 0 : i32
    return %c0_i32, %c0_i32_0 : i32, i32
  }
  func.func @transform_7(%arg0: i32) -> (i32, i32) {
    %c0_i32 = arith.constant 0 : i32
    %c0_i32_0 = arith.constant 0 : i32
    %c0_i32_1 = arith.constant 0 : i32
    return %c0_i32, %c0_i32_0 : i32, i32
  }
  func.func @transform_8(%arg0: i32) -> (i32, i32) {
    %c0_i32 = arith.constant 0 : i32
    %c0_i32_0 = arith.constant 0 : i32
    return %arg0, %c0_i32 : i32, i32
  }
}

</mosaic_0001>

<bundles_post_ra>
// kernel: tpu_custom_call.1
= control target key start
LH: loop header
LB: loop body
LE: loop exit
PB: predicated region body
PF: predicated region fallthrough
CT: control target
= control target key end

     0   :  { %v1748_v3 = vmov 0.0   ;;  %vm40_vm0 = vcmask 130048   ;;  %v1749_v49 = vmov 1966171168   ;;  %v188_v51 = vlaneseq  ;;  %s2164_s4 = inlined_call_operand.vmem [shape: f32[16,512], index: 4, kind: input, shape index: {}]   ;;  %s2165_s1 = inlined_call_operand.vmem [shape: s32[2,16], index: 1, kind: input, shape index: {}]   ;;  %s2166_s3 = inlined_call_operand.vmem [shape: bf16[512,48], index: 3, kind: input, shape index: {}]   ;;  %s2167_s2 = inlined_call_operand.vmem [shape: bf16[1024,48], index: 2, kind: input, shape index: {}]   ;;  %s2168_s0 = inlined_call_operand.vmem [shape: bf16[2,1024], index: 0, kind: input, shape index: {}]   ;;  %s2169_s5 = inlined_call_operand.vmem [shape: f32[1,512], index: 5, kind: input, shape index: {}]   ;;  %s2170_s7 = inlined_call_operand.vmem [shape: bf16[48,1], index: 7, kind: input, shape index: {}]   ;;  %s2171_s6 = inlined_call_operand.vmem [shape: f32[1,48], index: 6, kind: input, shape index: {}]   ;;  %s2172_s8 = inlined_call_operand.vmem [shape: f32[2,1], index: 8, kind: output, shape index: {}]  }
   0x1   :  { %v33_v0 = vld [vmem:[%s2164_s4 + $0x8] sm:$0xff]  ;;  %v32_v2 = vld [vmem:[%s2164_s4] sm:$0xff]  ;;  %108 = vmatprep.mubr.f32.mxu1 %v1748_v3  ;;  %v35_v7 = vld [vmem:[%s2164_s4 + $0x18] sm:$0xff]  ;;  %v692_v50 = vunpack.c.l.s4 %v1749_v49  ;;  %vm1751_vm9 = vmmov 0   ;;  %vm1325_vm10 = vcmask 392192   ;;  %vm1369_vm11 = vcmask 1024  }
   0x2   :  { %v37_v1 = vld [vmem:[%s2164_s4 + $0x28] sm:$0xff]  ;;  %v36_v5 = vld [vmem:[%s2164_s4 + $0x20] sm:$0xff]  ;;  %v39_v9 = vld [vmem:[%s2164_s4 + $0x38] sm:$0xff]  ;;  %v189_v53 = vshrl.u32 %v188_v51, 7 }
   0x3   :  { %v1636_v4 = vpack.c.bf16 %v37_v1, %v33_v0  ;;  %v30_v6 = vld [vmem:[%s2165_s1] sm:$0x3]  ;;  %v1638_v8 = vpack.c.bf16 %v36_v5, %v32_v2  ;;  %v34_v10 = vld [vmem:[%s2164_s4 + $0x10] sm:$0xff]  ;;  %v1640_v13 = vpack.c.bf16 %v39_v9, %v35_v7  ;;  %v1650_v17 = vld [vmem:[%s2166_s3 + $0x48] sm:$0xff]   ;;  %v693_v52 = vunpack.c.0.s8 %v692_v50 }
   0x4   :  { %v38_v11 = vld [vmem:[%s2164_s4 + $0x30] sm:$0xff]  ;;  %v31_v12 = vcvt.s32.f32 %v30_v6  ;;  %v1648_v14 = vld [vmem:[%s2166_s3 + $0x40] sm:$0xff]   ;;  %v1652_v19 = vld [vmem:[%s2166_s3 + $0x8] sm:$0xff]   ;;  %v190_v56 = vsub.s32 0, %v189_v53  ;;  %v194_v58 = vsub.s32 1, %v189_v53  ;;  %v198_v61 = vsub.s32 2, %v189_v53 }
   0x5   :  { %1637 = vmatprep.subr.bf16.mxu1 %v1636_v4  ;;  %v1642_v15 = vpack.c.bf16 %v38_v11, %v34_v10  ;;  %v1649_v16 = vld [vmem:[%s2166_s3] sm:$0xff]   ;;  %1490 = vmatprep.subr.bf16.mxu0 %v1648_v14  ;;  %v1654_v21 = vld [vmem:[%s2166_s3 + $0x50] sm:$0xff]   ;;  %v1655_v22 = vld [vmem:[%s2166_s3 + $0xc8] sm:$0xff]   ;;  %v1930_v54 = vsub.s32 %v693_v52, %v189_v53  ;;  %v202_v63 = vsub.s32 3, %v189_v53  ;;  %v1750_v10 = vmov 1.0|1.0  }
   0x6   :  { %1639 = vmatpush1.bf16.msra.mxu1 %v1638_v8  ;;  %1491 = vmatpush3.bf16.msra.mxu0 %v1649_v16  ;;  %v1651_v18 = vld [vmem:[%s2166_s3 + $0xc0] sm:$0xff]   ;;  %v1656_v23 = vld [vmem:[%s2166_s3 + $0x10] sm:$0xff]   ;;  %v1657_v24 = vld [vmem:[%s2166_s3 + $0x88] sm:$0xff]  }
   0x7   :  { %1641 = vmatprep.subr.bf16.mxu1 %v1640_v13  ;;  %1492 = vmatprep.subr.bf16.mxu0 %v1650_v17  ;;  %v1653_v20 = vld [vmem:[%s2166_s3 + $0x80] sm:$0xff]   ;;  %v1658_v25 = vld [vmem:[%s2166_s3 + $0x58] sm:$0xff]   ;;  %v1659_v26 = vld [vmem:[%s2166_s3 + $0xd0] sm:$0xff]  }
   0x8   :  { %v1660_v27 = vld [vmem:[%s2166_s3 + $0x18] sm:$0xff]   ;;  %v1661_v28 = vld [vmem:[%s2166_s3 + $0x90] sm:$0xff]   ;;  %v1662_v29 = vld [vmem:[%s2166_s3 + $0x60] sm:$0xff]  }
   0x9   :  { %1375 = vmatmul.mubr.msk.f32.vlgmr.msra.gmra.mrb[0].mxu1 %vm40_vm0, %v31_v12  ;;  %v1663_v30 = vld [vmem:[%s2166_s3 + $0xd8] sm:$0xff]   ;;  %v1664_v31 = vld [vmem:[%s2166_s3 + $0x20] sm:$0xff]   ;;  %v1666_v33 = vld [vmem:[%s2166_s3 + $0x68] sm:$0xff]  }
   0xa   :  { %1643 = vmatpush1.bf16.msra.mxu1 %v1642_v15  ;;  %179 = vmatprep.mubr.f32.mxu1 %v1748_v3  ;;  %v1665_v32 = vld [vmem:[%s2166_s3 + $0x98] sm:$0xff]   ;;  %v1667_v34 = vld [vmem:[%s2166_s3 + $0xe0] sm:$0xff]   ;;  %v1668_v35 = vld [vmem:[%s2166_s3 + $0x28] sm:$0xff]  }
   0xb   :  { %1512 = vmatprep.subr.bf16.mxu1 %v1651_v18  ;;  %1493 = vmatpush3.bf16.msra.mxu0 %v1652_v19  ;;  %v1669_v36 = vld [vmem:[%s2166_s3 + $0xa0] sm:$0xff]   ;;  %v1670_v37 = vld [vmem:[%s2166_s3 + $0x70] sm:$0xff]   ;;  %v1671_v38 = vld [vmem:[%s2166_s3 + $0xe8] sm:$0xff]  }
   0xc   :  { %1494 = vmatprep.subr.bf16.mxu0 %v1654_v21  ;;  %v1672_v39 = vld [vmem:[%s2166_s3 + $0x30] sm:$0xff]   ;;  %v1673_v40 = vld [vmem:[%s2166_s3 + $0xa8] sm:$0xff]   ;;  %v1674_v41 = vld [vmem:[%s2166_s3 + $0x78] sm:$0xff]  }
   0xd   :  { %1376 = vmatmul.mubr.msk.f32.vlgmr.msra.gmra.mrb[2].mxu1 %vm40_vm0, %v31_v12  ;;  %v1675_v42 = vld [vmem:[%s2166_s3 + $0xf0] sm:$0xff]   ;;  %v1676_v43 = vld [vmem:[%s2166_s3 + $0x38] sm:$0xff]   ;;  %v1679_v46 = vld [vmem:[%s2167_s2 + $0x40] sm:$0xff]  }
   0xe   :  { %1513 = vmatpush3.bf16.msra.mxu1 %v1653_v20  ;;  %v1677_v44 = vld [vmem:[%s2166_s3 + $0xb0] sm:$0xff]   ;;  %v1678_v45 = vld [vmem:[%s2166_s3 + $0xf8] sm:$0xff]   ;;  %v1683_v48 = vld [vmem:[%s2167_s2 + $0xc0] sm:$0xff]  }
   0xf   :  { %1514 = vmatprep.subr.bf16.mxu1 %v1655_v22  ;;  %1495 = vmatpush3.bf16.msra.mxu0 %v1656_v23  ;;  %v1680_v47 = vld [vmem:[%s2166_s3 + $0xb8] sm:$0xff]   ;;  %v1935_v55 = vld [vmem:[%s2168_s0] sm:$0xff]  ;;  %v1682_v8 = vld [vmem:[%s2167_s2 + $0x48] sm:$0xff]  }
  0x10   :  { %1496 = vmatprep.subr.bf16.mxu0 %v1658_v25  ;;  %v186_v57 = vld [vmem:[%s2169_s5] sm:$0xf]  ;;  %v1942_v59 = vrot.slane %v1935_v55, %v1930_v54  ;;  %v1684_v12 = vld [vmem:[%s2167_s2 + $0x8] sm:$0xff]   ;;  %v1686_v14 = vld [vmem:[%s2167_s2 + $0x50] sm:$0xff]  }
  0x11   :  { %v191_v60 = vrot.slane %v186_v57, %v190_v56  ;;  %v195_v62 = vrot.slane %v186_v57, %v194_v58  ;;  %v199_v4 = vrot.slane %v186_v57, %v198_v61  ;;  %v203_v5 = vrot.slane %v186_v57, %v202_v63  ;;  %v1681_v6 = vld [vmem:[%s2167_s2] sm:$0xff]   ;;  %v1687_v15 = vld [vmem:[%s2167_s2 + $0xc8] sm:$0xff]   ;;  %v1688_v17 = vld [vmem:[%s2167_s2 + $0x10] sm:$0xff]  }
  0x12   :  { %1515 = vmatpush3.bf16.msra.mxu1 %v1657_v24  ;;  %v705_v0 = vcombine.high %v1942_v59, %v1942_v59  ;;  %v1685_v13 = vld [vmem:[%s2167_s2 + $0x80] sm:$0xff]   ;;  %v1689_v18 = vld [vmem:[%s2167_s2 + $0x88] sm:$0xff]   ;;  %v1690_v19 = vld [vmem:[%s2167_s2 + $0x58] sm:$0xff]  }
  0x13   :  { %1516 = vmatprep.subr.bf16.mxu1 %v1659_v26  ;;  %1497 = vmatpush3.bf16.msra.mxu0 %v1660_v27  ;;  %v1691_v20 = vld [vmem:[%s2167_s2 + $0xd0] sm:$0xff]   ;;  %v1692_v21 = vld [vmem:[%s2167_s2 + $0x18] sm:$0xff]   ;;  %v1694_v23 = vld [vmem:[%s2167_s2 + $0x60] sm:$0xff]  }
  0x14   :  { %1498 = vmatprep.subr.bf16.mxu0 %v1662_v29  ;;  %v727_v7 = vrot.slane %v705_v0, %v1930_v54  ;;  %v1693_v22 = vld [vmem:[%s2167_s2 + $0x90] sm:$0xff]   ;;  %v1695_v24 = vld [vmem:[%s2167_s2 + $0xd8] sm:$0xff]   ;;  %v1696_v25 = vld [vmem:[%s2167_s2 + $0x20] sm:$0xff]  }
  0x15   :  { %v1697_v26 = vld [vmem:[%s2167_s2 + $0x98] sm:$0xff]   ;;  %v1698_v27 = vld [vmem:[%s2167_s2 + $0x68] sm:$0xff]   ;;  %v1717_v52 = vld [vmem:[%s2167_s2 + $0x180] sm:$0xff]  }
  0x16   :  { %1517 = vmatpush3.bf16.msra.mxu1 %v1661_v28  ;;  %v737_v16 = vcombine.high %v727_v7, %v727_v7  ;;  %v1699_v28 = vld [vmem:[%s2167_s2 + $0xe0] sm:$0xff]   ;;  %v1700_v29 = vld [vmem:[%s2167_s2 + $0x28] sm:$0xff]   ;;  %v1718_v53 = vld [vmem:[%s2167_s2 + $0x150] sm:$0xff]  }
  0x17   :  { %1518 = vmatprep.subr.bf16.mxu1 %v1663_v30  ;;  %1499 = vmatpush3.bf16.msra.mxu0 %v1664_v31  ;;  %v1701_v30 = vld [vmem:[%s2167_s2 + $0xa0] sm:$0xff]   ;;  %v1702_v31 = vld [vmem:[%s2167_s2 + $0x70] sm:$0xff]   ;;  %v1716_v51 = vld [vmem:[%s2167_s2 + $0x108] sm:$0xff]  }
  0x18   :  { %1500 = vmatprep.subr.bf16.mxu0 %v1666_v33  ;;  %v690_v33 = vcombine.high %v1935_v55, %v1935_v55  ;;  %v1719_v55 = vld [vmem:[%s2167_s2 + $0x1c8] sm:$0xff]   ;;  %v1720_v57 = vld [vmem:[%s2167_s2 + $0x110] sm:$0xff]   ;;  %v1724_v61 = vld [vmem:[%s2167_s2 + $0x118] sm:$0xff]  }
  0x19   :  { %v1721_v58 = vld [vmem:[%s2167_s2 + $0x188] sm:$0xff]   ;;  %v1726_v63 = vld [vmem:[%s2167_s2 + $0x160] sm:$0xff]   ;;  %v1727_v0 = vld [vmem:[%s2167_s2 + $0x1d8] sm:$0xff]  }
  0x1a   :  { %1519 = vmatpush3.bf16.msra.mxu1 %v1665_v32  ;;  %v1703_v32 = vld [vmem:[%s2167_s2 + $0xe8] sm:$0xff]  }
  0x1b   :  { %1520 = vmatprep.subr.bf16.mxu1 %v1667_v34  ;;  %1501 = vmatpush3.bf16.msra.mxu0 %v1668_v35  ;;  %v1704_v34 = vld [vmem:[%s2167_s2 + $0x30] sm:$0xff]   ;;  %v1705_v35 = vld [vmem:[%s2167_s2 + $0xa8] sm:$0xff]  }
  0x1c   :  { %1502 = vmatprep.subr.bf16.mxu0 %v1670_v37  ;;  %v1707_v37 = vld [vmem:[%s2167_s2 + $0xf0] sm:$0xff]  }
  0x1e   :  { %1521 = vmatpush3.bf16.msra.mxu1 %v1669_v36  ;;  %v1706_v36 = vld [vmem:[%s2167_s2 + $0x78] sm:$0xff]  }
  0x1f   :  { %1522 = vmatprep.subr.bf16.mxu1 %v1671_v38  ;;  %1503 = vmatpush3.bf16.msra.mxu0 %v1672_v39  ;;  %v2028_v38 = vrot.slane %v690_v33, %v1930_v54  ;;  %v1708_v39 = vld [vmem:[%s2167_s2 + $0x38] sm:$0xff]  }
  0x20   :  { %1504 = vmatprep.subr.bf16.mxu0 %v1674_v41  ;;  %v1710_v41 = vld [vmem:[%s2167_s2 + $0xf8] sm:$0xff]  }
  0x22   :  { %1523 = vmatpush3.bf16.msra.mxu1 %v1673_v40  ;;  %v1709_v40 = vld [vmem:[%s2167_s2 + $0xb0] sm:$0xff]  }
  0x23   :  { %1524 = vmatprep.subr.bf16.mxu1 %v1675_v42  ;;  %1505 = vmatpush3.bf16.msra.mxu0 %v1676_v43  ;;  %v1711_v42 = vld [vmem:[%s2167_s2 + $0x140] sm:$0xff]   ;;  %v706_v43 = vcombine.high %v2028_v38, %v2028_v38 }
  0x24   :  { %1534 = vmatprep.subr.bf16.mxu0 %v1679_v46  ;;  %v1713_v46 = vld [vmem:[%s2167_s2 + $0x100] sm:$0xff]  }
  0x25   :  { %v734_v49 = vrot.slane %v706_v43, %v1930_v54 }
  0x26   :  { %1525 = vmatpush3.bf16.msra.mxu1 %v1677_v44  ;;  %v713_v44 = vrot.slane %v1942_v59, %v1930_v54  ;;  %v1722_v59 = vld [vmem:[%s2167_s2 + $0x158] sm:$0xff]  }
  0x27   :  { %1526 = vmatprep.subr.bf16.mxu1 %v1678_v45  ;;  %v1712_v45 = vld [vmem:[%s2167_s2 + $0xb8] sm:$0xff]   ;;  %v738_v56 = vcombine.high %v734_v49, %v734_v49 }
  0x28   :  { %v735_v50 = vcombine.high %v713_v44, %v713_v44 }
  0x2a   :  { %1527 = vmatpush3.bf16.msra.mxu1 %v1680_v47  ;;  %v1714_v47 = vld [vmem:[%s2167_s2 + $0x148] sm:$0xff]  }
  0x2b   :  { %1556 = vmatprep.subr.bf16.mxu1 %v1683_v48  ;;  %v1715_v48 = vld [vmem:[%s2167_s2 + $0x1c0] sm:$0xff]  }
  0xdc   :  { %v110_v1 = vpop.f32.mrb[0].mxu1 }
  0xdd   :  { %vm208_vm1 = vcmp.eq.f32.partialorder %v110_v1, %v191_v60  ;;  %v112_v2 = vpop.f32.mrb[1].mxu1  ;;  %v1723_v60 = vld [vmem:[%s2167_s2 + $0x1d0] sm:$0xff]   ;;  %v1728_v1 = vld [vmem:[%s2167_s2 + $0x120] sm:$0xff]  }
  0xde   :  { %vm209_vm2 = vcmp.eq.f32.partialorder %v112_v2, %v195_v62  ;;  %vm1415_vm4 = vmpackc.low %vm208_vm1, %vm208_vm1  ;;  %v1725_v62 = vld [vmem:[%s2167_s2 + $0x190] sm:$0xff]   ;;  %v1729_v2 = vld [vmem:[%s2167_s2 + $0x198] sm:$0xff]  }
  0xdf   :  { %vm1413_vm3 = vmpackc.low %vm209_vm2, %vm209_vm2 }
  0xe0   :  { %v181_v9 = vpop.f32.mrb[2].mxu1  ;;  %1414 = vmatprep.mubr.msk.bf16.mxu0 %vm1413_vm3, %v1750_v10 }
  0xe1   :  { %vm210_vm5 = vcmp.eq.f32.partialorder %v181_v9, %v199_v4  ;;  %v183_v11 = vpop.f32.mrb[3].mxu1  ;;  %1416 = vmatmul.mubr.msk.bf16.vlgmr.msra.gmra.mrb[0].mxu0 %vm1415_vm4, %v1750_v10  ;;  %v1730_v4 = vld [vmem:[%s2167_s2 + $0x168] sm:$0xff]  }
  0xe2   :  { %vm211_vm6 = vcmp.eq.f32.partialorder %v183_v11, %v203_v5  ;;  %1535 = vmatpush3.bf16.msra.mxu0 %v1681_v6  ;;  %1163 = vmatprep.mubr.bf16.mxu0 %v727_v7  ;;  %vm1419_vm8 = vmpackc.low %vm210_vm5, %vm210_vm5  ;;  %v1731_v5 = vld [vmem:[%s2167_s2 + $0x1e0] sm:$0xff]   ;;  %v1732_v6 = vld [vmem:[%s2167_s2 + $0x128] sm:$0xff]  }
  0xe3   :  { %vm1417_vm7 = vmpackc.low %vm211_vm6, %vm211_vm6  ;;  %1536 = vmatprep.subr.bf16.mxu0 %v1682_v8  ;;  %v1733_v7 = vld [vmem:[%s2167_s2 + $0x1a0] sm:$0xff]   ;;  %v1734_v8 = vld [vmem:[%s2167_s2 + $0x170] sm:$0xff]  }
  0xe4   :  { %1418 = vmatprep.mubr.msk.bf16.mxu1 %vm1417_vm7, %v1750_v10  ;;  %v1735_v9 = vld [vmem:[%s2167_s2 + $0x1e8] sm:$0xff]  }
  0xe5   :  { %1420 = vmatmul.mubr.msk.bf16.vlgmr.msra.gmra.mrb[4].mxu1 %vm1419_vm8, %v1750_v10  ;;  %v1736_v10 = vld [vmem:[%s2167_s2 + $0x130] sm:$0xff]   ;;  %v1737_v11 = vld [vmem:[%s2167_s2 + $0x1a8] sm:$0xff]  }
  0xe6   :  { %1537 = vmatpush3.bf16.msra.mxu0 %v1684_v12  ;;  %1557 = vmatpush3.bf16.msra.mxu1 %v1685_v13  ;;  %v1738_v12 = vld [vmem:[%s2167_s2 + $0x178] sm:$0xff]   ;;  %v1739_v13 = vld [vmem:[%s2167_s2 + $0x1f0] sm:$0xff]  }
  0xe7   :  { %1538 = vmatprep.subr.bf16.mxu0 %v1686_v14  ;;  %1558 = vmatprep.subr.bf16.mxu1 %v1687_v15  ;;  %v1740_v14 = vld [vmem:[%s2167_s2 + $0x138] sm:$0xff]   ;;  %v1741_v15 = vld [vmem:[%s2167_s2 + $0x1b0] sm:$0xff]  }
  0xe8   :  { %1203 = vmatprep.mubr.bf16.mxu1 %v737_v16  ;;  %v1743_v16 = vld [vmem:[%s2167_s2 + $0x1f8] sm:$0xff]  }
  0xea   :  { %1539 = vmatpush3.bf16.msra.mxu0 %v1688_v17  ;;  %1559 = vmatpush3.bf16.msra.mxu1 %v1689_v18  ;;  %v720_v17 = vrot.slane %v2028_v38, %v1930_v54  ;;  %v1744_v18 = vld [vmem:[%s2167_s2 + $0x1b8] sm:$0xff]   ;;  %v1746_v54 = vld [vmem:[%s2170_s7 + $0x8] sm:$0xff]  }
  0xeb   :  { %1540 = vmatprep.subr.bf16.mxu0 %v1690_v19  ;;  %1560 = vmatprep.subr.bf16.mxu1 %v1691_v20  ;;  %v1745_v20 = vld [vmem:[%s2170_s7] sm:$0xff]  }
  0xec   :  { %v736_v19 = vcombine.high %v720_v17, %v720_v17 }
  0xee   :  { %1541 = vmatpush3.bf16.msra.mxu0 %v1692_v21  ;;  %1561 = vmatpush3.bf16.msra.mxu1 %v1693_v22  ;;  %v1747_v21 = vld [vmem:[%s2170_s7 + $0x10] sm:$0xff]  }
  0xef   :  { %1542 = vmatprep.subr.bf16.mxu0 %v1694_v23  ;;  %1562 = vmatprep.subr.bf16.mxu1 %v1695_v24 }
  0xf2   :  { %1543 = vmatpush3.bf16.msra.mxu0 %v1696_v25  ;;  %1563 = vmatpush3.bf16.msra.mxu1 %v1697_v26 }
  0xf3   :  { %1544 = vmatprep.subr.bf16.mxu0 %v1698_v27  ;;  %1564 = vmatprep.subr.bf16.mxu1 %v1699_v28 }
  0xf6   :  { %1545 = vmatpush3.bf16.msra.mxu0 %v1700_v29  ;;  %1565 = vmatpush3.bf16.msra.mxu1 %v1701_v30 }
  0xf7   :  { %1546 = vmatprep.subr.bf16.mxu0 %v1702_v31  ;;  %1566 = vmatprep.subr.bf16.mxu1 %v1703_v32 }
  0xfa   :  { %1547 = vmatpush3.bf16.msra.mxu0 %v1704_v34  ;;  %1567 = vmatpush3.bf16.msra.mxu1 %v1705_v35 }
  0xfb   :  { %1548 = vmatprep.subr.bf16.mxu0 %v1706_v36  ;;  %1568 = vmatprep.subr.bf16.mxu1 %v1707_v37 }
  0xfe   :  { %1549 = vmatpush3.bf16.msra.mxu0 %v1708_v39  ;;  %1569 = vmatpush3.bf16.msra.mxu1 %v1709_v40 }
  0xff   :  { %1570 = vmatprep.subr.bf16.mxu1 %v1710_v41  ;;  %1578 = vmatprep.subr.bf16.mxu0 %v1711_v42 }
 0x101   :  { %1164 = vmatmul.mubr.bf16.vlgmr.msra.gmra.mrb[4].mxu0 %v713_v44 }
 0x102   :  { %1571 = vmatpush3.bf16.msra.mxu1 %v1712_v45  ;;  %1579 = vmatpush3.bf16.msra.mxu0 %v1713_v46 }
 0x103   :  { %1580 = vmatprep.subr.bf16.mxu0 %v1714_v47  ;;  %1600 = vmatprep.subr.bf16.mxu1 %v1715_v48 }
 0x104   :  { %1243 = vmatprep.mubr.bf16.mxu0 %v734_v49 }
 0x105   :  { %1204 = vmatmul.mubr.bf16.vlgmr.msra.gmra.mrb[8].mxu1 %v735_v50 }
 0x106   :  { %1581 = vmatpush3.bf16.msra.mxu0 %v1716_v51  ;;  %1601 = vmatpush3.bf16.msra.mxu1 %v1717_v52 }
 0x107   :  { %1582 = vmatprep.subr.bf16.mxu0 %v1718_v53  ;;  %1602 = vmatprep.subr.bf16.mxu1 %v1719_v55  ;;  %v1485_v55 = vld [vmem:[%s2171_s6] ss:$0 sm:$0xff] }
 0x108   :  { %1283 = vmatprep.mubr.bf16.mxu1 %v738_v56 }
 0x10a   :  { %1583 = vmatpush3.bf16.msra.mxu0 %v1720_v57  ;;  %1603 = vmatpush3.bf16.msra.mxu1 %v1721_v58 }
 0x10b   :  { %1584 = vmatprep.subr.bf16.mxu0 %v1722_v59  ;;  %1604 = vmatprep.subr.bf16.mxu1 %v1723_v60 }
 0x10e   :  { %1585 = vmatpush3.bf16.msra.mxu0 %v1724_v61  ;;  %1605 = vmatpush3.bf16.msra.mxu1 %v1725_v62 }
 0x10f   :  { %1586 = vmatprep.subr.bf16.mxu0 %v1726_v63  ;;  %1606 = vmatprep.subr.bf16.mxu1 %v1727_v0 }
 0x112   :  { %1587 = vmatpush3.bf16.msra.mxu0 %v1728_v1  ;;  %1607 = vmatpush3.bf16.msra.mxu1 %v1729_v2 }
 0x113   :  { %1588 = vmatprep.subr.bf16.mxu0 %v1730_v4  ;;  %1608 = vmatprep.subr.bf16.mxu1 %v1731_v5 }
 0x116   :  { %1589 = vmatpush3.bf16.msra.mxu0 %v1732_v6  ;;  %1609 = vmatpush3.bf16.msra.mxu1 %v1733_v7 }
 0x117   :  { %1590 = vmatprep.subr.bf16.mxu0 %v1734_v8  ;;  %1610 = vmatprep.subr.bf16.mxu1 %v1735_v9 }
 0x11a   :  { %1591 = vmatpush3.bf16.msra.mxu0 %v1736_v10  ;;  %1611 = vmatpush3.bf16.msra.mxu1 %v1737_v11 }
 0x11b   :  { %1592 = vmatprep.subr.bf16.mxu0 %v1738_v12  ;;  %1612 = vmatprep.subr.bf16.mxu1 %v1739_v13 }
 0x11e   :  { %1593 = vmatpush3.bf16.msra.mxu0 %v1740_v14  ;;  %1613 = vmatpush3.bf16.msra.mxu1 %v1741_v15 }
 0x11f   :  { %1614 = vmatprep.subr.bf16.mxu1 %v1743_v16  ;;  %1626 = vmatprep.subr.bf16.mxu0 %v1748_v3 }
 0x121   :  { %1244 = vmatmul.mubr.bf16.vlgmr.msra.gmra.mrb[8].mxu0 %v720_v17 }
 0x122   :  { %1615 = vmatpush3.bf16.msra.mxu1 %v1744_v18  ;;  %1627 = vmatpush3.bf16.msra.mxu0 %v1745_v20 }
 0x123   :  { %1628 = vmatprep.subr.bf16.mxu0 %v1748_v3  ;;  %1632 = vmatprep.mubr.msk.bf16.mxu0 %vm1751_vm9, %v1748_v3 }
 0x125   :  { %1284 = vmatmul.mubr.bf16.vlgmr.msra.gmra.mrb[12].mxu1 %v736_v19 }
 0x126   :  { %1629 = vmatpush3.bf16.msra.mxu0 %v1746_v54 }
 0x127   :  { %1630 = vmatprep.subr.bf16.mxu0 %v1748_v3 }
 0x12a   :  { %1631 = vmatpush3.bf16.msra.mxu0 %v1747_v21 }
 0x1b4   :  { %v1506_v22 = vpop.f32.mrb[0].mxu0 }
 0x1b5   :  { %v1507_v23 = vpop.f32.mrb[1].mxu0 }
 0x1b6   :  { %v1508_v24 = vadd.f32 %v1507_v23, %v1506_v22  ;;  %v1509_v25 = vpop.f32.mrb[2].mxu0 }
 0x1b7   :  { %v1510_v26 = vpop.f32.mrb[3].mxu0 }
 0x1b8   :  { %v1528_v27 = vpop.f32.mrb[4].mxu1 }
 0x1b9   :  { %v1529_v28 = vpop.f32.mrb[5].mxu1 }
 0x1ba   :  { %v1530_v29 = vadd.f32 %v1529_v28, %v1528_v27  ;;  %v1531_v30 = vpop.f32.mrb[6].mxu1 }
 0x1bb   :  { %v1532_v31 = vpop.f32.mrb[7].mxu1 }
 0x1bc   :  { %v684_v32 = vadd.f32 %v1530_v29, %v1508_v24 }
 0x1d4   :  { %v1550_v33 = vpop.f32.mrb[4].mxu0 }
 0x1d5   :  { %v1551_v34 = vpop.f32.mrb[5].mxu0 }
 0x1d6   :  { %v1552_v35 = vadd.f32 %v1551_v34, %v1550_v33  ;;  %v1553_v36 = vpop.f32.mrb[6].mxu0 }
 0x1d7   :  { %v1554_v37 = vpop.f32.mrb[7].mxu0 }
 0x1d8   :  { %v1166_v38 = vadd.f32 %v1552_v35, %v684_v32  ;;  %v1572_v39 = vpop.f32.mrb[8].mxu1 }
 0x1d9   :  { %v1573_v40 = vpop.f32.mrb[9].mxu1 }
 0x1da   :  { %v1574_v3 = vadd.f32 %v1573_v40, %v1572_v39  ;;  %v1575_v41 = vpop.f32.mrb[10].mxu1 }
 0x1db   :  { %v1576_v42 = vpop.f32.mrb[11].mxu1 }
 0x1dc   :  { %v1206_v43 = vadd.f32 %v1574_v3, %v1166_v38 }
 0x1f4   :  { %v1594_v44 = vpop.f32.mrb[8].mxu0 }
 0x1f5   :  { %v1595_v45 = vpop.f32.mrb[9].mxu0 }
 0x1f6   :  { %v1596_v46 = vadd.f32 %v1595_v45, %v1594_v44  ;;  %v1597_v47 = vpop.f32.mrb[10].mxu0 }
 0x1f7   :  { %v1598_v48 = vpop.f32.mrb[11].mxu0 }
 0x1f8   :  { %v1246_v49 = vadd.f32 %v1596_v46, %v1206_v43  ;;  %v1616_v50 = vpop.f32.mrb[12].mxu1 }
 0x1f9   :  { %v1617_v51 = vpop.f32.mrb[13].mxu1 }
 0x1fa   :  { %v1618_v52 = vadd.f32 %v1617_v51, %v1616_v50  ;;  %v1619_v53 = vpop.f32.mrb[14].mxu1 }
 0x1fb   :  { %v1620_v56 = vpop.f32.mrb[15].mxu1 }
 0x1fc   :  { %v1286_v57 = vadd.f32 %v1618_v52, %v1246_v49 }
 0x1fe   :  { %v1298_v58 = vadd.f32 %v1485_v55, %v1286_v57 }
 0x200   :  { %v1299_v59 = vmax.f32 %v1298_v58, 0.0 }
 0x202   :  { %v1300_v60 = vpack.c.bf16 %v1299_v59, %v1299_v59 }
 0x204   :  { %1633 = vmatmul.mubr.msk.bf16.vlgmr.msra.gmra.mrb[12].mxu0 %vm1325_vm10, %v1300_v60 }
 0x2d7   :  { %v1363_v61 = vpop.f32.mrb[12].mxu0 }
 0x2d8   :  { %1370 = vst.msk [vmem:[%s2172_s8] sm:$0x3] %vm1369_vm11, %v1363_v61  ;;  %v1634_v62 = vpop.f32.mrb[13].mxu0 }
 0x2d9   :  { %v1366_v63 = vpop.f32.mrb[14].mxu0 }
 0x2da   :  { %v1635_v0 = vpop.f32.mrb[15].mxu0 }

</bundles_post_ra>
